<compile_context>
chip_gen: v6e
topology: v6e:2x2x1
jax: 0.10.0
libtpu: 0.0.40
codegen_flags: <defaults>
</compile_context>

<pallas_src>
import functools
import math

import jax
import jax.numpy as jnp
from jax.experimental import pallas as pl
from jax.experimental.pallas import tpu as pltpu

EMBED_SIZE = 6
NUM_HEADS = 2
HEAD_DIM = EMBED_SIZE // NUM_HEADS


def _mhsa_kernel(v_ref, k_ref, q_ref, w_ref, b_ref, wo_ref, o_ref,
                 *, num_heads, head_dim):
    Bb, Lq, E = q_ref.shape
    Lk = k_ref.shape[1]
    Lv = v_ref.shape[1]

    # Flatten batch into the sublane dim for the projection matmuls (leading-dim merge
    # only, no lane relayout).
    q2 = q_ref[...].reshape(Bb * Lq, E)
    k2 = k_ref[...].reshape(Bb * Lk, E)
    v2 = v_ref[...].reshape(Bb * Lv, E)

    w = w_ref[...]    # (3, E, E)
    b = b_ref[...]    # (3, E): [bq*scale, bv, bo]

    # One fused projection matmul per Q/K/V (all heads at once): 3 MXU pushes, not 6.
    # 1/sqrt(head_dim) is folded into w[0]/b[0]; K bias is dropped (softmax-invariant).
    Q = (jnp.dot(q2, w[0], preferred_element_type=jnp.float32)
         + b[0:1, :]).reshape(Bb, Lq, E)
    K = jnp.dot(k2, w[1],
                preferred_element_type=jnp.float32).reshape(Bb, Lk, E)
    V = (jnp.dot(v2, w[2], preferred_element_type=jnp.float32)
         + b[1:2, :]).reshape(Bb, Lv, E)

    # Static unroll over heads; per-head Q/K/V are static lane slices (intra-vreg at hd=3).
    ctx_heads = []
    for h in range(num_heads):
        lo = h * head_dim
        hi = lo + head_dim
        Qh = Q[:, :, lo:hi]                                            # (Bb, Lq, hd)
        Kh = K[:, :, lo:hi]                                            # (Bb, Lk, hd)
        Vh = V[:, :, lo:hi]                                            # (Bb, Lv, hd)

        energy = jnp.einsum('bqd,bkd->bqk', Qh, Kh,
                            preferred_element_type=jnp.float32)        # (Bb, Lq, Lk)
        m = jnp.max(energy, axis=-1, keepdims=True)
        p = jnp.exp(energy - m)                                        # unnormalized probs
        s = jnp.sum(p, axis=-1, keepdims=True)
        inv = pl.reciprocal(s, approx=True)                            # EUP slot
        inv = inv * (2.0 - s * inv)                                    # Newton step -> ~f32 exact

        # Deferred normalization: scale the hd-wide ctx, not the Lk-wide p tensor.
        ctx = jnp.einsum('bqk,bkd->bqd', p, Vh,
                         preferred_element_type=jnp.float32)           # (Bb, Lq, hd)
        ctx_heads.append(ctx * inv)

    # Lane-concatenate heads (offsets 0 and hd inside one vreg) and do a single Wo matmul.
    ctx_all = jnp.concatenate(ctx_heads, axis=-1).reshape(Bb * Lq, E)  # (Bb*Lq, E)
    out = jnp.dot(ctx_all, wo_ref[...],
                  preferred_element_type=jnp.float32) + b[2:3, :]
    o_ref[...] = out.reshape(Bb, Lq, E).astype(o_ref.dtype)


def multi_head_self_attention(value, key, query, params, mask=None, *, batch_blocks=1):
    """Pallas MHSA forward. value/key/query: (B, L, E) float32.

    Keep batch_blocks=1 at toy sizes (even on v7x): splitting the grid across
    TensorCores only pays off once the per-core block dwarfs the ~0.35 us
    per-grid-step overhead.
    """
    assert mask is None, "mask is not supported by this Pallas kernel"
    B, Lq, E = query.shape
    Lk = key.shape[1]
    Lv = value.shape[1]
    assert E == EMBED_SIZE
    assert B % batch_blocks == 0
    Bb = B // batch_blocks

    H, hd = NUM_HEADS, HEAD_DIM
    scale = 1.0 / math.sqrt(hd)

    # nn.Linear weight is (out, in); transpose to (in, out) so y = x @ W^T + b.
    # Softmax scale is folded into the Q projection; bk is dropped (cancels in softmax).
    w_qkv = jnp.stack([params["wq"].T * scale,
                       params["wk"].T,
                       params["wv"].T])                       # (3, E, E)
    b_all = jnp.stack([params["bq"] * scale,
                       params["bv"],
                       params["bo"]])                         # (3, E) lane-dense rows
    wo_t = params["wo"].T                                     # (E, E)

    kernel = functools.partial(_mhsa_kernel, num_heads=H, head_dim=hd)

    return pl.pallas_call(
        kernel,
        out_shape=jax.ShapeDtypeStruct((B, Lq, E), query.dtype),
        grid_spec=pltpu.PrefetchScalarGridSpec(
            num_scalar_prefetch=0,
            grid=(batch_blocks,),
            in_specs=[
                pl.BlockSpec((Bb, Lv, E), lambda i: (i, 0, 0)),   # value
                pl.BlockSpec((Bb, Lk, E), lambda i: (i, 0, 0)),   # key
                pl.BlockSpec((Bb, Lq, E), lambda i: (i, 0, 0)),   # query
                pl.BlockSpec((3, E, E), lambda i: (0, 0, 0)),     # fused Wq/Wk/Wv
                pl.BlockSpec((3, E), lambda i: (0, 0)),           # bq*scale / bv / bo
                pl.BlockSpec((E, E), lambda i: (0, 0)),           # Wo^T
            ],
            out_specs=pl.BlockSpec((Bb, Lq, E), lambda i: (i, 0, 0)),
        ),
        compiler_params=pltpu.CompilerParams(
            dimension_semantics=("parallel",)),
    )(value, key, query, w_qkv, b_all, wo_t)


def _reference(value, key, query, params):
    """Pure-JAX reference mirroring the PyTorch forward (mask=None)."""
    B, Lq, E = query.shape
    Q = query @ params["wq"].T + params["bq"]
    K = key @ params["wk"].T + params["bk"]
    V = value @ params["wv"].T + params["bv"]
    Q = Q.reshape(B, Lq, NUM_HEADS, HEAD_DIM).transpose(0, 2, 1, 3)
    K = K.reshape(B, key.shape[1], NUM_HEADS, HEAD_DIM).transpose(0, 2, 1, 3)
    V = V.reshape(B, value.shape[1], NUM_HEADS, HEAD_DIM).transpose(0, 2, 1, 3)
    energy = jnp.einsum("bhqd,bhkd->bhqk", Q, K) / (HEAD_DIM ** 0.5)
    attn = jax.nn.softmax(energy, axis=-1)
    out = jnp.einsum("bhqk,bhkd->bhqd", attn, V)
    out = out.transpose(0, 2, 1, 3).reshape(B, Lq, E)
    return out @ params["wo"].T + params["bo"]


def _init_params(key):
    # deterministic init matching nn.Linear shapes: weight (out, in), bias (out,)
    ks = jax.random.split(key, 8)
    bound = 1.0 / (EMBED_SIZE ** 0.5)
    u = lambda k, shape: jax.random.uniform(k, shape, jnp.float32, -bound, bound)
    return {
        "wq": u(ks[0], (EMBED_SIZE, EMBED_SIZE)), "bq": u(ks[1], (EMBED_SIZE,)),
        "wk": u(ks[2], (EMBED_SIZE, EMBED_SIZE)), "bk": u(ks[3], (EMBED_SIZE,)),
        "wv": u(ks[4], (EMBED_SIZE, EMBED_SIZE)), "bv": u(ks[5], (EMBED_SIZE,)),
        "wo": u(ks[6], (EMBED_SIZE, EMBED_SIZE)), "bo": u(ks[7], (EMBED_SIZE,)),
    }


if __name__ == "__main__":
    root = jax.random.PRNGKey(0)
    kp, kv, kk, kq = jax.random.split(root, 4)

    B, L = 2, 8  # small batch / sequence length
    params = _init_params(kp)
    value = jax.random.normal(kv, (B, L, EMBED_SIZE), jnp.float32)
    key_t = jax.random.normal(kk, (B, L, EMBED_SIZE), jnp.float32)
    query = jax.random.normal(kq, (B, L, EMBED_SIZE), jnp.float32)

    out = multi_head_self_attention(value, key_t, query, params, mask=None,
                                    batch_blocks=1)
    out = jax.block_until_ready(out)

    ref = _reference(value, key_t, query, params)
    assert out.shape == (B, L, EMBED_SIZE)
    # Newton-refined EUP reciprocal (applied post-PV, in f32) is ~f32-exact.
    assert jnp.allclose(out, ref, atol=1e-4, rtol=1e-4)
    print("KERNEL_OK")
</pallas_src>

<mosaic_0001>
module attributes {stable_mosaic.version = 11 : i64} {
  func.func @_mhsa_kernel(%arg0: i32, %arg1: memref<2x8x6xf32, #tpu.memory_space<vmem>>, %arg2: memref<2x8x6xf32, #tpu.memory_space<vmem>>, %arg3: memref<2x8x6xf32, #tpu.memory_space<vmem>>, %arg4: memref<3x6x6xf32, #tpu.memory_space<vmem>>, %arg5: memref<3x6xf32, #tpu.memory_space<vmem>>, %arg6: memref<6x6xf32, #tpu.memory_space<vmem>>, %arg7: memref<2x8x6xf32, #tpu.memory_space<vmem>>) attributes {dimension_semantics = [#tpu.dimension_semantics<parallel>], iteration_bounds = array<i64: 1>, scalar_prefetch = 0 : i64, scratch_operands = 0 : i64, tpu.core_type = #tpu.core_type<tc>, window_params = [{transform_indices = @transform_0, window_bounds = array<i64: 2, 8, 6>}, {transform_indices = @transform_1, window_bounds = array<i64: 2, 8, 6>}, {transform_indices = @transform_2, window_bounds = array<i64: 2, 8, 6>}, {pipeline_mode = #tpu.pipeline_mode<synchronous>, transform_indices = @transform_3, window_bounds = array<i64: 3, 6, 6>}, {pipeline_mode = #tpu.pipeline_mode<synchronous>, transform_indices = @transform_4, window_bounds = array<i64: 3, 6>}, {pipeline_mode = #tpu.pipeline_mode<synchronous>, transform_indices = @transform_5, window_bounds = array<i64: 6, 6>}, {transform_indices = @transform_6, window_bounds = array<i64: 2, 8, 6>}]} {
    %c0 = arith.constant 0 : index
    %c0_0 = arith.constant 0 : index
    %c0_1 = arith.constant 0 : index
    %0 = vector.load %arg3[%c0, %c0_0, %c0_1] : memref<2x8x6xf32, #tpu.memory_space<vmem>>, vector<2x8x6xf32>
    %1 = vector.shape_cast %0 : vector<2x8x6xf32> to vector<16x6xf32>
    %c0_2 = arith.constant 0 : index
    %c0_3 = arith.constant 0 : index
    %c0_4 = arith.constant 0 : index
    %2 = vector.load %arg2[%c0_2, %c0_3, %c0_4] : memref<2x8x6xf32, #tpu.memory_space<vmem>>, vector<2x8x6xf32>
    %3 = vector.shape_cast %2 : vector<2x8x6xf32> to vector<16x6xf32>
    %c0_5 = arith.constant 0 : index
    %c0_6 = arith.constant 0 : index
    %c0_7 = arith.constant 0 : index
    %4 = vector.load %arg1[%c0_5, %c0_6, %c0_7] : memref<2x8x6xf32, #tpu.memory_space<vmem>>, vector<2x8x6xf32>
    %5 = vector.shape_cast %4 : vector<2x8x6xf32> to vector<16x6xf32>
    %c0_8 = arith.constant 0 : index
    %c0_9 = arith.constant 0 : index
    %c0_10 = arith.constant 0 : index
    %6 = vector.load %arg4[%c0_8, %c0_9, %c0_10] : memref<3x6x6xf32, #tpu.memory_space<vmem>>, vector<3x6x6xf32>
    %c0_11 = arith.constant 0 : index
    %c0_12 = arith.constant 0 : index
    %7 = vector.load %arg5[%c0_11, %c0_12] : memref<3x6xf32, #tpu.memory_space<vmem>>, vector<3x6xf32>
    %8 = vector.extract_strided_slice %6 {offsets = [0, 0, 0], sizes = [1, 6, 6], strides = [1, 1, 1]} : vector<3x6x6xf32> to vector<1x6x6xf32>
    %9 = vector.shape_cast %8 : vector<1x6x6xf32> to vector<6x6xf32>
    %cst = arith.constant dense<0.000000e+00> : vector<16x6xf32>
    %10 = tpu.matmul %1, %9, %cst {dimension_numbers = #tpu.dot_dimension_numbers<[1], [0], [0], [1], [0, 0, 1, 1], [], []>} : vector<16x6xf32>, vector<6x6xf32>, vector<16x6xf32> -> vector<16x6xf32>
    %11 = vector.extract_strided_slice %7 {offsets = [0, 0], sizes = [1, 6], strides = [1, 1]} : vector<3x6xf32> to vector<1x6xf32>
    %12 = vector.broadcast %11 : vector<1x6xf32> to vector<16x6xf32>
    %13 = arith.addf %10, %12 : vector<16x6xf32>
    %14 = vector.shape_cast %13 : vector<16x6xf32> to vector<2x8x6xf32>
    %15 = vector.extract_strided_slice %6 {offsets = [1, 0, 0], sizes = [1, 6, 6], strides = [1, 1, 1]} : vector<3x6x6xf32> to vector<1x6x6xf32>
    %16 = vector.shape_cast %15 : vector<1x6x6xf32> to vector<6x6xf32>
    %cst_13 = arith.constant dense<0.000000e+00> : vector<16x6xf32>
    %17 = tpu.matmul %3, %16, %cst_13 {dimension_numbers = #tpu.dot_dimension_numbers<[1], [0], [0], [1], [0, 0, 1, 1], [], []>} : vector<16x6xf32>, vector<6x6xf32>, vector<16x6xf32> -> vector<16x6xf32>
    %18 = vector.shape_cast %17 : vector<16x6xf32> to vector<2x8x6xf32>
    %19 = vector.extract_strided_slice %6 {offsets = [2, 0, 0], sizes = [1, 6, 6], strides = [1, 1, 1]} : vector<3x6x6xf32> to vector<1x6x6xf32>
    %20 = vector.shape_cast %19 : vector<1x6x6xf32> to vector<6x6xf32>
    %cst_14 = arith.constant dense<0.000000e+00> : vector<16x6xf32>
    %21 = tpu.matmul %5, %20, %cst_14 {dimension_numbers = #tpu.dot_dimension_numbers<[1], [0], [0], [1], [0, 0, 1, 1], [], []>} : vector<16x6xf32>, vector<6x6xf32>, vector<16x6xf32> -> vector<16x6xf32>
    %22 = vector.extract_strided_slice %7 {offsets = [1, 0], sizes = [1, 6], strides = [1, 1]} : vector<3x6xf32> to vector<1x6xf32>
    %23 = vector.broadcast %22 : vector<1x6xf32> to vector<16x6xf32>
    %24 = arith.addf %21, %23 : vector<16x6xf32>
    %25 = vector.shape_cast %24 : vector<16x6xf32> to vector<2x8x6xf32>
    %26 = vector.extract_strided_slice %14 {offsets = [0, 0, 0], sizes = [2, 8, 3], strides = [1, 1, 1]} : vector<2x8x6xf32> to vector<2x8x3xf32>
    %27 = vector.extract_strided_slice %18 {offsets = [0, 0, 0], sizes = [2, 8, 3], strides = [1, 1, 1]} : vector<2x8x6xf32> to vector<2x8x3xf32>
    %28 = vector.extract_strided_slice %25 {offsets = [0, 0, 0], sizes = [2, 8, 3], strides = [1, 1, 1]} : vector<2x8x6xf32> to vector<2x8x3xf32>
    "tpu.trace_start"() <{level = 10 : i32, message = "bqd,bkd->bqk"}> : () -> ()
    %cst_15 = arith.constant dense<0.000000e+00> : vector<2x8x8xf32>
    %29 = tpu.matmul %26, %27, %cst_15 {dimension_numbers = #tpu.dot_dimension_numbers<[2], [2], [1], [1], [0, 0, 0, 1, 1, 1], [0], [0]>} : vector<2x8x3xf32>, vector<2x8x3xf32>, vector<2x8x8xf32> -> vector<2x8x8xf32>
    "tpu.trace_stop"() : () -> ()
    %cst_16 = arith.constant dense<0xFF800000> : vector<2x8xf32>
    %30 = vector.multi_reduction <maximumf>, %29, %cst_16 [2] : vector<2x8x8xf32> to vector<2x8xf32>
    %31 = vector.shape_cast %30 : vector<2x8xf32> to vector<2x8x1xf32>
    %32 = vector.broadcast %31 : vector<2x8x1xf32> to vector<2x8x8xf32>
    %33 = arith.subf %29, %32 : vector<2x8x8xf32>
    %34 = math.exp %33 : vector<2x8x8xf32>
    %cst_17 = arith.constant dense<0.000000e+00> : vector<2x8xf32>
    %35 = vector.multi_reduction <add>, %34, %cst_17 [2] : vector<2x8x8xf32> to vector<2x8xf32>
    %36 = vector.shape_cast %35 : vector<2x8xf32> to vector<2x8x1xf32>
    %37 = tpu.reciprocal %36 {approx = true} : vector<2x8x1xf32> -> vector<2x8x1xf32>
    %38 = arith.mulf %36, %37 : vector<2x8x1xf32>
    %cst_18 = arith.constant 2.000000e+00 : f32
    %39 = vector.broadcast %cst_18 : f32 to vector<2x8x1xf32>
    %40 = arith.subf %39, %38 : vector<2x8x1xf32>
    %41 = arith.mulf %37, %40 : vector<2x8x1xf32>
    "tpu.trace_start"() <{level = 10 : i32, message = "bqk,bkd->bqd"}> : () -> ()
    %cst_19 = arith.constant dense<0.000000e+00> : vector<2x8x3xf32>
    %42 = tpu.matmul %34, %28, %cst_19 {dimension_numbers = #tpu.dot_dimension_numbers<[2], [1], [1], [2], [0, 0, 0, 1, 1, 2], [0], [0]>} : vector<2x8x8xf32>, vector<2x8x3xf32>, vector<2x8x3xf32> -> vector<2x8x3xf32>
    "tpu.trace_stop"() : () -> ()
    %43 = vector.broadcast %41 : vector<2x8x1xf32> to vector<2x8x3xf32>
    %44 = arith.mulf %42, %43 : vector<2x8x3xf32>
    %45 = vector.extract_strided_slice %14 {offsets = [0, 0, 3], sizes = [2, 8, 3], strides = [1, 1, 1]} : vector<2x8x6xf32> to vector<2x8x3xf32>
    %46 = vector.extract_strided_slice %18 {offsets = [0, 0, 3], sizes = [2, 8, 3], strides = [1, 1, 1]} : vector<2x8x6xf32> to vector<2x8x3xf32>
    %47 = vector.extract_strided_slice %25 {offsets = [0, 0, 3], sizes = [2, 8, 3], strides = [1, 1, 1]} : vector<2x8x6xf32> to vector<2x8x3xf32>
    "tpu.trace_start"() <{level = 10 : i32, message = "bqd,bkd->bqk"}> : () -> ()
    %cst_20 = arith.constant dense<0.000000e+00> : vector<2x8x8xf32>
    %48 = tpu.matmul %45, %46, %cst_20 {dimension_numbers = #tpu.dot_dimension_numbers<[2], [2], [1], [1], [0, 0, 0, 1, 1, 1], [0], [0]>} : vector<2x8x3xf32>, vector<2x8x3xf32>, vector<2x8x8xf32> -> vector<2x8x8xf32>
    "tpu.trace_stop"() : () -> ()
    %cst_21 = arith.constant dense<0xFF800000> : vector<2x8xf32>
    %49 = vector.multi_reduction <maximumf>, %48, %cst_21 [2] : vector<2x8x8xf32> to vector<2x8xf32>
    %50 = vector.shape_cast %49 : vector<2x8xf32> to vector<2x8x1xf32>
    %51 = vector.broadcast %50 : vector<2x8x1xf32> to vector<2x8x8xf32>
    %52 = arith.subf %48, %51 : vector<2x8x8xf32>
    %53 = math.exp %52 : vector<2x8x8xf32>
    %cst_22 = arith.constant dense<0.000000e+00> : vector<2x8xf32>
    %54 = vector.multi_reduction <add>, %53, %cst_22 [2] : vector<2x8x8xf32> to vector<2x8xf32>
    %55 = vector.shape_cast %54 : vector<2x8xf32> to vector<2x8x1xf32>
    %56 = tpu.reciprocal %55 {approx = true} : vector<2x8x1xf32> -> vector<2x8x1xf32>
    %57 = arith.mulf %55, %56 : vector<2x8x1xf32>
    %cst_23 = arith.constant 2.000000e+00 : f32
    %58 = vector.broadcast %cst_23 : f32 to vector<2x8x1xf32>
    %59 = arith.subf %58, %57 : vector<2x8x1xf32>
    %60 = arith.mulf %56, %59 : vector<2x8x1xf32>
    "tpu.trace_start"() <{level = 10 : i32, message = "bqk,bkd->bqd"}> : () -> ()
    %cst_24 = arith.constant dense<0.000000e+00> : vector<2x8x3xf32>
    %61 = tpu.matmul %53, %47, %cst_24 {dimension_numbers = #tpu.dot_dimension_numbers<[2], [1], [1], [2], [0, 0, 0, 1, 1, 2], [0], [0]>} : vector<2x8x8xf32>, vector<2x8x3xf32>, vector<2x8x3xf32> -> vector<2x8x3xf32>
    "tpu.trace_stop"() : () -> ()
    %62 = vector.broadcast %60 : vector<2x8x1xf32> to vector<2x8x3xf32>
    %63 = arith.mulf %61, %62 : vector<2x8x3xf32>
    %64 = tpu.concatenate %44, %63 in 2 : vector<2x8x3xf32>, vector<2x8x3xf32> -> vector<2x8x6xf32>
    %65 = vector.shape_cast %64 : vector<2x8x6xf32> to vector<16x6xf32>
    %c0_25 = arith.constant 0 : index
    %c0_26 = arith.constant 0 : index
    %66 = vector.load %arg6[%c0_25, %c0_26] : memref<6x6xf32, #tpu.memory_space<vmem>>, vector<6x6xf32>
    %cst_27 = arith.constant dense<0.000000e+00> : vector<16x6xf32>
    %67 = tpu.matmul %65, %66, %cst_27 {dimension_numbers = #tpu.dot_dimension_numbers<[1], [0], [0], [1], [0, 0, 1, 1], [], []>} : vector<16x6xf32>, vector<6x6xf32>, vector<16x6xf32> -> vector<16x6xf32>
    %68 = vector.extract_strided_slice %7 {offsets = [2, 0], sizes = [1, 6], strides = [1, 1]} : vector<3x6xf32> to vector<1x6xf32>
    %69 = vector.broadcast %68 : vector<1x6xf32> to vector<16x6xf32>
    %70 = arith.addf %67, %69 : vector<16x6xf32>
    %71 = vector.shape_cast %70 : vector<16x6xf32> to vector<2x8x6xf32>
    %c0_28 = arith.constant 0 : index
    %c0_29 = arith.constant 0 : index
    %c0_30 = arith.constant 0 : index
    %72 = vector.load %arg7[%c0_28, %c0_29, %c0_30] : memref<2x8x6xf32, #tpu.memory_space<vmem>>, vector<2x8x6xf32>
    tpu.vector_store %arg7[%c0_28, %c0_29, %c0_30], %71 {strides = array<i32>} : memref<2x8x6xf32, #tpu.memory_space<vmem>>, vector<2x8x6xf32>,
    return
  }
  func.func @transform_0(%arg0: i32) -> (i32, i32, i32) {
    %c0_i32 = arith.constant 0 : i32
    %c0_i32_0 = arith.constant 0 : i32
    %c0_i32_1 = arith.constant 0 : i32
    return %arg0, %c0_i32, %c0_i32_0 : i32, i32, i32
  }
  func.func @transform_1(%arg0: i32) -> (i32, i32, i32) {
    %c0_i32 = arith.constant 0 : i32
    %c0_i32_0 = arith.constant 0 : i32
    %c0_i32_1 = arith.constant 0 : i32
    return %arg0, %c0_i32, %c0_i32_0 : i32, i32, i32
  }
  func.func @transform_2(%arg0: i32) -> (i32, i32, i32) {
    %c0_i32 = arith.constant 0 : i32
    %c0_i32_0 = arith.constant 0 : i32
    %c0_i32_1 = arith.constant 0 : i32
    return %arg0, %c0_i32, %c0_i32_0 : i32, i32, i32
  }
  func.func @transform_3(%arg0: i32) -> (i32, i32, i32) {
    %c0_i32 = arith.constant 0 : i32
    %c0_i32_0 = arith.constant 0 : i32
    %c0_i32_1 = arith.constant 0 : i32
    %c0_i32_2 = arith.constant 0 : i32
    return %c0_i32, %c0_i32_0, %c0_i32_1 : i32, i32, i32
  }
  func.func @transform_4(%arg0: i32) -> (i32, i32) {
    %c0_i32 = arith.constant 0 : i32
    %c0_i32_0 = arith.constant 0 : i32
    %c0_i32_1 = arith.constant 0 : i32
    return %c0_i32, %c0_i32_0 : i32, i32
  }
  func.func @transform_5(%arg0: i32) -> (i32, i32) {
    %c0_i32 = arith.constant 0 : i32
    %c0_i32_0 = arith.constant 0 : i32
    %c0_i32_1 = arith.constant 0 : i32
    return %c0_i32, %c0_i32_0 : i32, i32
  }
  func.func @transform_6(%arg0: i32) -> (i32, i32, i32) {
    %c0_i32 = arith.constant 0 : i32
    %c0_i32_0 = arith.constant 0 : i32
    %c0_i32_1 = arith.constant 0 : i32
    return %arg0, %c0_i32, %c0_i32_0 : i32, i32, i32
  }
}

</mosaic_0001>

<bundles_post_ra>
// kernel: tpu_custom_call.1
= control target key start
LH: loop header
LB: loop body
LE: loop exit
PB: predicated region body
PF: predicated region fallthrough
CT: control target
= control target key end

     0   :  { %vm44_vm0 = vcmask 1045504   ;;  %vm37_vm1 = vcmask 48128   ;;  %v1198_v9 = vmov 0.0   ;;  %vm1199_vm2 = vmmov 0   ;;  %s1200_s13 = smov 125   ;;  %s1201_s15 = smov 3   ;;  %s1362_s3 = inlined_call_operand.vmem [shape: f32[3,6,6], index: 3, kind: input, shape index: {}]   ;;  %s1363_s2 = inlined_call_operand.vmem [shape: f32[2,8,6], index: 2, kind: input, shape index: {}]   ;;  %s1364_s1 = inlined_call_operand.vmem [shape: f32[2,8,6], index: 1, kind: input, shape index: {}]   ;;  %s1365_s0 = inlined_call_operand.vmem [shape: f32[2,8,6], index: 0, kind: input, shape index: {}]   ;;  %s1366_s4 = inlined_call_operand.vmem [shape: f32[3,6], index: 4, kind: input, shape index: {}]   ;;  %s1367_s5 = inlined_call_operand.vmem [shape: f32[6,6], index: 5, kind: input, shape index: {}]   ;;  %s1368_s6 = inlined_call_operand.vmem [shape: f32[2,8,6], index: 6, kind: output, shape index: {}]  }
   0x1   :  { %v29_v0 = vld [vmem:[%s1362_s3] sm:$0x3f]  ;;  %v30_v1 = vld [vmem:[%s1362_s3 + $0x8] sm:$0x3f]  ;;  %v31_v6 = vld [vmem:[%s1362_s3 + $0x10] sm:$0x3f]  ;;  %v33_v10 = vlaneseq }
   0x2   :  { %v23_v2 = vld [vmem:[%s1363_s2] sm:$0xff]  ;;  %1118 = vmatprep.subr.msk.mxu0 %vm44_vm0, %v29_v0  ;;  %1123 = vmatprep.subr.msk.mxu1 %vm44_vm0, %v30_v1  ;;  %v24_v3 = vld [vmem:[%s1363_s2 + $0x8] sm:$0xff]  ;;  %vm295_vm3 = vcmask 23552   ;;  %vm448_vm4 = vcmask 64512  }
   0x3   :  { %v25_v4 = vld [vmem:[%s1364_s1] sm:$0xff]  ;;  %v26_v5 = vld [vmem:[%s1364_s1 + $0x8] sm:$0xff]  ;;  %1119 = vmatpush3.msk.msra.mxu0 %vm44_vm0, %v29_v0  ;;  %1120 = vmatprep.mubr.msk.f32.mxu0 %vm37_vm1, %v23_v2  ;;  %v1282_v11 = vshrl.u32 %v33_v10, 7 }
   0x4   :  { %v27_v7 = vld [vmem:[%s1365_s0] sm:$0xff]  ;;  %1124 = vmatpush3.msk.msra.mxu1 %vm44_vm0, %v30_v1  ;;  %1125 = vmatprep.mubr.msk.f32.mxu1 %vm37_vm1, %v25_v4  ;;  %v28_v8 = vld [vmem:[%s1365_s0 + $0x8] sm:$0xff] }
   0x5   :  { %1121 = vmatmul.mubr.msk.f32.vlgmr.msra.gmra.mxu0 %vm37_vm1, %v24_v3  ;;  %1126 = vmatmul.mubr.msk.f32.vlgmr.msra.gmra.mxu1 %vm37_vm1, %v26_v5  ;;  %v35_v12 = vsub.s32 0, %v1282_v11  ;;  %v1288_v13 = vld [vmem:[%s1366_s4] sm:$0x7]  ;;  %v209_v15 = vsub.s32 1, %v1282_v11 }
   0x6   :  { %1128 = vmatprep.subr.msk.mxu0 %vm44_vm0, %v31_v6  ;;  %1130 = vmatprep.mubr.msk.f32.mxu0 %vm37_vm1, %v27_v7 }
   0x7   :  { %1129 = vmatpush3.msk.msra.mxu0 %vm44_vm0, %v31_v6  ;;  %1133 = vmatprep.subr.mxu1 %v1198_v9  ;;  %v36_v14 = vrot.slane %v1288_v13, %v35_v12  ;;  %v210_v19 = vrot.slane %v1288_v13, %v209_v15 }
   0x8   :  { %1138 = vmatprep.subr.mxu0 %v1198_v9  ;;  %1135 = vmatprep.mubr.msk.f32.mxu1 %vm1199_vm2, %v1198_v9 }
   0x9   :  { %1131 = vmatmul.mubr.msk.f32.vlgmr.msra.gmra.mxu0 %vm37_vm1, %v28_v8 }
   0xa   :  { %1140 = vmatprep.mubr.msk.f32.mxu0 %vm1199_vm2, %v1198_v9 }
  0xc5   :  { %v1122_v16 = vpop.f32.mrf.mxu0  ;;  %v1127_v17 = vpop.f32.mrf.mxu1 }
  0xc6   :  { %v120_v18 = vadd.f32 %v1122_v16, %v36_v14  ;;  %1139 = vmatpush3.xpose.msk.msra.mxu0 %vm295_vm3, %v1127_v17 }
  0xc7   :  { %v114_v20 = vpop.f32.mrf.mxu0  ;;  %v198_v21 = vpop.f32.mrf.mxu1  ;;  %1148 = vmatprep.subr.mxu0 %v1198_v9 }
  0xc8   :  { %v115_v22 = vadd.f32 %v114_v20, %v36_v14  ;;  %625 = vrot.lane.b32.xlu1 %v198_v21, %s1200_s13  ;;  %1134 = vmatpush3.xpose.msk.msra.mxu1 %vm295_vm3, %v198_v21 }
  0xc9   :  { %1141 = vmatmul.mubr.msk.f32.vlgmr.msra.gmra.mxu0 %vm295_vm3, %v120_v18  ;;  %v1132_v23 = vpop.f32.mrf.mxu0  ;;  %1143 = vmatprep.subr.mxu1 %v1198_v9 }
  0xca   :  { %v292_v24 = vadd.f32 %v1132_v23, %v210_v19  ;;  %1150 = vmatprep.mubr.msk.f32.mxu0 %vm1199_vm2, %v1198_v9 }
  0xcb   :  { %1136 = vmatmul.mubr.msk.f32.vlgmr.msra.gmra.mxu1 %vm295_vm3, %v115_v22  ;;  %v286_v25 = vpop.f32.mrf.mxu0 }
  0xcc   :  { %703 = vrot.lane.b32.xlu1 %v1127_v17, %s1200_s13  ;;  %v287_v26 = vadd.f32 %v286_v25, %v210_v19  ;;  %1149 = vmatpush3.msra.mxu0 %v292_v24 }
  0xcd   :  { %1145 = vmatprep.mubr.msk.f32.mxu1 %vm1199_vm2, %v1198_v9  ;;  %1158 = vmatprep.subr.mxu0 %v1198_v9 }
  0xce   :  { %1144 = vmatpush3.msra.mxu1 %v287_v26 }
  0xcf   :  { %1153 = vmatprep.subr.mxu1 %v1198_v9 }
  0xd0   :  { %701 = vrot.lane.b32.xlu1 %v120_v18, %s1200_s13 }
 0x13a   :  { %v626_v39 = vpop.permute.xlu1 %625 }
 0x13e   :  { %v704_v41 = vpop.permute.xlu1 %703 }
 0x142   :  { %v702_v44 = vpop.permute.xlu1 %701 }
 0x189   :  { %v444_v27 = vpop.f32.mrf.mxu0 }
 0x18a   :  { %v452_v32 = vsel %vm448_vm4, %v444_v27, -inf }
 0x18b   :  { %v368_v28 = vpop.f32.mrf.mxu1  ;;  %v1142_v29 = vpop.f32.mrf.mxu0 }
 0x18c   :  { %v449_v30 = vsel %vm448_vm4, %v368_v28, -inf }
 0x18d   :  { %450 = vmax.xlane.f32.xlu0 %v449_v30  ;;  %v1137_v31 = vpop.f32.mrf.mxu1 }
 0x191   :  { %453 = vmax.xlane.f32.xlu0 %v452_v32 }
 0x1a7   :  { %623 = vrot.lane.b32.xlu0 %v115_v22, %s1200_s13 }
 0x216   :  { %v451_v33 = vpop.xlane.xlu0 %450 }
 0x217   :  { %v455_v34 = vsub.f32 %v368_v28, %v451_v33 }
 0x219   :  { %v457_v35 = vmul.f32 1.442695, %v455_v34 }
 0x21a   :  { %v454_v36 = vpop.xlane.xlu0 %453 }
 0x21b   :  { %1182 = vpow2.f32 %v457_v35  ;;  %v456_v37 = vsub.f32 %v444_v27, %v454_v36 }
 0x21d   :  { %v459_v38 = vmul.f32 1.442695, %v456_v37 }
 0x21e   :  { %v624_v43 = vpop.permute.xlu0 %623 }
 0x21f   :  { %1184 = vpow2.f32 %v459_v38 }
 0x228   :  { %v1183_v40 = vpop.eup %1182 }
 0x229   :  { %1146 = vmatmul.mubr.msk.f32.vlgmr.msra.gmra.mxu1 %vm448_vm4, %v1183_v40  ;;  %v461_v3 = vsel %vm448_vm4, %v1183_v40, 0.0  ;;  %v974_v40 = vsub.s32 2, %v1282_v11 }
 0x22a   :  { %1154 = vmatpush3.xpose.msk.msra.mxu1 %vm295_vm3, %v626_v39  ;;  %1155 = vmatprep.mubr.msk.f32.mxu1 %vm1199_vm2, %v1198_v9 }
 0x22b   :  { %1163 = vmatprep.subr.mxu1 %v1198_v9 }
 0x22c   :  { %v1185_v42 = vpop.eup %1184 }
 0x22d   :  { %1151 = vmatmul.mubr.msk.f32.vlgmr.msra.gmra.mxu0 %vm448_vm4, %v1185_v42  ;;  %1156 = vmatmul.mubr.msk.f32.vlgmr.msra.gmra.mxu1 %vm295_vm3, %v624_v43  ;;  %v464_v4 = vsel %vm448_vm4, %v1185_v42, 0.0 }
 0x22e   :  { %1159 = vmatpush3.xpose.msk.msra.mxu0 %vm295_vm3, %v704_v41  ;;  %1160 = vmatprep.mubr.msk.f32.mxu0 %vm1199_vm2, %v1198_v9  ;;  %v975_v41 = vrot.slane %v1288_v13, %v974_v40 }
 0x22f   :  { %1168 = vmatprep.subr.mxu0 %v1198_v9  ;;  %1165 = vmatprep.mubr.msk.f32.mxu1 %vm1199_vm2, %v1198_v9 }
 0x231   :  { %1161 = vmatmul.mubr.msk.f32.vlgmr.msra.gmra.mxu0 %vm295_vm3, %v702_v44 }
 0x232   :  { %1170 = vmatprep.mubr.msk.f32.mxu0 %vm1199_vm2, %v1198_v9  ;;  %v971_v9 = vld [vmem:[%s1367_s5] sm:$0x3f] }
 0x2e9   :  { %v1327_v45 = vpop.f32.mrf.mxu1 }
 0x2eb   :  { %v1147_v46 = vpop.f32.mrf.mxu1 }
 0x2ed   :  { %v1329_v47 = vpop.f32.mrf.mxu0  ;;  %v697_v48 = vpop.f32.mrf.mxu1 }
 0x2ee   :  { %v779_v49 = vsel %vm448_vm4, %v697_v48, -inf }
 0x2ef   :  { %v1152_v50 = vpop.f32.mrf.mxu0  ;;  %780 = vmax.xlane.f32.xlu1 %v779_v49  ;;  %v1157_v51 = vpop.f32.mrf.mxu1 }
 0x2f1   :  { %v775_v52 = vpop.f32.mrf.mxu0 }
 0x2f2   :  { %v782_v53 = vsel %vm448_vm4, %v775_v52, -inf }
 0x2f3   :  { %783 = vmax.xlane.f32.xlu0 %v782_v53  ;;  %v1162_v54 = vpop.f32.mrf.mxu0 }
 0x300   :  { %806 = vrot.lane.b32.xlu1 %v287_v26, %s1200_s13 }
 0x309   :  { %883 = vrot.lane.b32.xlu0 %v292_v24, %s1200_s13 }
 0x378   :  { %v781_v55 = vpop.xlane.xlu1 %780 }
 0x379   :  { %v785_v56 = vsub.f32 %v697_v48, %v781_v55 }
 0x37b   :  { %v787_v57 = vmul.f32 1.442695, %v785_v56 }
 0x37c   :  { %v784_v58 = vpop.xlane.xlu0 %783  ;;  %v807_v59 = vpop.permute.xlu1 %806 }
 0x37d   :  { %1186 = vpow2.f32 %v787_v57  ;;  %v786_v60 = vsub.f32 %v775_v52, %v784_v58  ;;  %1164 = vmatpush3.msra.mxu1 %v807_v59 }
 0x37e   :  { %1173 = vmatprep.subr.msk.mxu1 %vm44_vm0, %v971_v9 }
 0x37f   :  { %v789_v61 = vmul.f32 1.442695, %v786_v60 }
 0x380   :  { %v884_v62 = vpop.permute.xlu0 %883 }
 0x381   :  { %1188 = vpow2.f32 %v789_v61  ;;  %1169 = vmatpush3.msra.mxu0 %v884_v62 }
 0x38a   :  { %v1187_v63 = vpop.eup %1186 }
 0x38b   :  { %1166 = vmatmul.mubr.msk.f32.vlgmr.msra.gmra.mxu1 %vm448_vm4, %v1187_v63  ;;  %v791_v0 = vsel %vm448_vm4, %v1187_v63, 0.0 }
 0x38c   :  { %792 = vadd.xlane.f32.xlu1 %v791_v0  ;;  %1174 = vmatpush3.msk.msra.mxu1 %vm44_vm0, %v971_v9 }
 0x38e   :  { %v1189_v1 = vpop.eup %1188 }
 0x38f   :  { %1171 = vmatmul.mubr.msk.f32.vlgmr.msra.gmra.mxu0 %vm448_vm4, %v1189_v1  ;;  %v794_v2 = vsel %vm448_vm4, %v1189_v1, 0.0 }
 0x390   :  { %795 = vadd.xlane.f32.xlu0 %v794_v2  ;;  %462 = vadd.xlane.f32.xlu1 %v461_v3 }
 0x394   :  { %465 = vadd.xlane.f32.xlu1 %v464_v4 }
 0x415   :  { %v793_v5 = vpop.xlane.xlu1 %792 }
 0x416   :  { %1190 = vrcp.f32 %v793_v5 }
 0x419   :  { %v796_v6 = vpop.xlane.xlu0 %795  ;;  %v463_v24 = vpop.xlane.xlu1 %462 }
 0x41a   :  { %1192 = vrcp.f32 %v796_v6 }
 0x41b   :  { %1194 = vrcp.f32 %v463_v24 }
 0x41d   :  { %v466_v25 = vpop.xlane.xlu1 %465 }
 0x41e   :  { %1196 = vrcp.f32 %v466_v25 }
 0x423   :  { %v1191_v7 = vpop.eup %1190 }
 0x424   :  { %v799_v8 = vmul.f32 %v1191_v7, %v793_v5 }
 0x426   :  { %v801_v12 = vsub.f32 2.0, %v799_v8 }
 0x427   :  { %v1193_v10 = vpop.eup %1192 }
 0x428   :  { %v800_v14 = vmul.f32 %v1193_v10, %v796_v6  ;;  %v803_v16 = vmul.f32 %v1191_v7, %v801_v12  ;;  %v1195_v26 = vpop.eup %1194 }
 0x429   :  { %v469_v27 = vmul.f32 %v1195_v26, %v463_v24 }
 0x42a   :  { %v802_v15 = vsub.f32 2.0, %v800_v14 }
 0x42b   :  { %v1197_v28 = vpop.eup %1196  ;;  %v471_v29 = vsub.f32 2.0, %v469_v27 }
 0x42c   :  { %v804_v20 = vmul.f32 %v1193_v10, %v802_v15  ;;  %v470_v30 = vmul.f32 %v1197_v28, %v466_v25 }
 0x42d   :  { %v473_v31 = vmul.f32 %v1195_v26, %v471_v29 }
 0x42e   :  { %v472_v32 = vsub.f32 2.0, %v470_v30 }
 0x42f   :  { %v621_v34 = vmul.f32 %v1327_v45, %v473_v31 }
 0x430   :  { %v474_v33 = vmul.f32 %v1197_v28, %v472_v32 }
 0x432   :  { %v622_v37 = vmul.f32 %v1329_v47, %v474_v33 }
 0x44b   :  { %v878_v17 = vpop.f32.mrf.mxu1 }
 0x44c   :  { %v959_v18 = vmul.f32 %v878_v17, %v803_v16 }
 0x44d   :  { %v1167_v19 = vpop.f32.mrf.mxu1 }
 0x44e   :  { %963 = vrot.lane.b32.xlu1 %v959_v18, %s1201_s15 }
 0x44f   :  { %v955_v21 = vpop.f32.mrf.mxu0 }
 0x450   :  { %v960_v22 = vmul.f32 %v955_v21, %v804_v20 }
 0x451   :  { %v1172_v23 = vpop.f32.mrf.mxu0 }
 0x452   :  { %965 = vrot.lane.b32.xlu0 %v960_v22, %s1201_s15 }
 0x4c0   :  { %v964_v35 = vpop.permute.xlu1 %963 }
 0x4c1   :  { %v969_v36 = vsel %vm295_vm3, %v621_v34, %v964_v35 }
 0x4c2   :  { %1175 = vmatprep.mubr.msk.f32.mxu1 %vm37_vm1, %v969_v36 }
 0x4c4   :  { %v966_v38 = vpop.permute.xlu0 %965 }
 0x4c5   :  { %v970_v39 = vsel %vm295_vm3, %v622_v37, %v966_v38 }
 0x4c6   :  { %1176 = vmatmul.mubr.msk.f32.vlgmr.msra.gmra.mxu1 %vm37_vm1, %v970_v39 }
 0x586   :  { %v1177_v42 = vpop.f32.mrf.mxu1 }
 0x587   :  { %v1057_v43 = vadd.f32 %v1177_v42, %v975_v41 }
 0x588   :  { %v1051_v44 = vpop.f32.mrf.mxu1 }
 0x589   :  { %1061 = vst.msk [vmem:[%s1368_s6 + $0x8] sm:$0xff] %vm37_vm1, %v1057_v43  ;;  %v1052_v45 = vadd.f32 %v1051_v44, %v975_v41 }
 0x58b   :  { %1060 = vst.msk [vmem:[%s1368_s6] sm:$0xff] %vm37_vm1, %v1052_v45 }

</bundles_post_ra>
